<compile_context>
chip_gen: v5e
topology: v5e:2x2
jax: 0.10.0
libtpu: 0.0.40
codegen_flags: <defaults>
</compile_context>

<pallas_src>
import functools

import jax
import jax.numpy as jnp
from jax.experimental import pallas as pl
from jax.experimental.pallas import tpu as pltpu

_HIGHEST = jax.lax.Precision.HIGHEST


def _lowrank_kernel(x_ref, wh_ref, wt_ref, o_ref, *,
                    ranks, stage_num, eps, n_true, batch_block, approx_recip):
    """Processes `batch_block` images per grid step.

    x_ref : (batch_block, C_in, N_pad)  input block  (H*W on the lane axis)
    wh_ref: (C_out, C_in)  head 1x1-conv weight (VMEM resident, constant map)
    wt_ref: (C_in, C_out)  tail 1x1-conv weight (VMEM resident, constant map)
    o_ref : (batch_block, C_in, N_pad)  output block
    """
    wh = wh_ref[...]
    wt = wt_ref[...]
    c_out = wh.shape[0]
    inv_n = 1.0 / float(n_true)

    # Column-index iota used to pack the R columns of U into one (C_out, R)
    # operand for the folded tail conv (single tiny MXU matmul, no concat).
    col = jax.lax.broadcasted_iota(jnp.int32, (c_out, ranks), 1)

    def _recip(d):
        # approx=True sends the reciprocal to the EUP (own VLIW slot); keep the
        # exact path by default so the strict correctness check holds.
        return pl.reciprocal(d, approx=approx_recip)

    # Static unroll over the batch elements of this block (compile-time const).
    for b in range(batch_block):
        xb = x_ref[b]                                                # (C_in, N)

        # Head 1x1 conv + ReLU (MXU, exact f32 accumulation).
        X = jnp.dot(wh, xb, preferred_element_type=jnp.float32,
                    precision=_HIGHEST)                              # (C_out, N)
        X = jnp.maximum(X, 0.0)

        # NMF init: every rank starts from the same spatial / channel mean.
        # Padded spatial columns of X are exactly 0 -> divide by the true N.
        u0 = jnp.sum(X, axis=1, keepdims=True) * inv_n               # (C_out, 1)
        v0 = jnp.mean(X, axis=0, keepdims=True)                      # (1, N)
        U = [u0] * ranks
        V = [v0] * ranks

        # stage_num multiplicative updates.
        for _ in range(stage_num):
            # ---- V update: V_r *= (U^T X)_r / ((U^T U) V)_r --------------
            # Gram G[r,s] = <U_r, U_s>, kept as (1,1) tiles (no rank-0 values).
            G = [[None] * ranks for _ in range(ranks)]
            for r in range(ranks):
                for s in range(r, ranks):
                    g = jnp.sum(U[r] * U[s], axis=0, keepdims=True)  # (1, 1)
                    G[r][s] = g
                    G[s][r] = g
            V_new = []
            for r in range(ranks):
                num = jnp.sum(U[r] * X, axis=0, keepdims=True)       # (1, N)
                den = G[r][0] * V[0]
                for s in range(1, ranks):
                    den = den + G[r][s] * V[s]
                V_new.append(V[r] * (num * _recip(den + eps)))
            V = V_new

            # ---- U update: U_r *= (X V^T)_r / (U (V V^T))_r --------------
            Hm = [[None] * ranks for _ in range(ranks)]
            for r in range(ranks):
                for s in range(r, ranks):
                    h = jnp.sum(V[r] * V[s], axis=1, keepdims=True)  # (1, 1)
                    Hm[r][s] = h
                    Hm[s][r] = h
            U_new = []
            for r in range(ranks):
                num = jnp.sum(X * V[r], axis=1, keepdims=True)       # (C_out, 1)
                den = Hm[r][0] * U[0]
                for s in range(1, ranks):
                    den = den + Hm[r][s] * U[s]
                U_new.append(U[r] * (num * _recip(den + eps)))
            U = U_new

        # ---- Tail 1x1 conv folded through the factorization ---------------
        #   out = w_t @ (sum_r U_r V_r) + x = sum_r (w_t @ U_r) V_r + x
        u_mat = jnp.where(col == 0, U[0], 0.0)                       # (C_out, R)
        for r in range(1, ranks):
            u_mat = jnp.where(col == r, U[r], u_mat)
        tu = jnp.dot(wt, u_mat, preferred_element_type=jnp.float32,
                     precision=_HIGHEST)                             # (C_in, R)
        out = tu[:, 0:1] * V[0]
        for r in range(1, ranks):
            out = out + tu[:, r:r + 1] * V[r]                        # (C_in, N)
        out = out + xb.astype(jnp.float32)                           # residual
        o_ref[b] = out.astype(o_ref.dtype)


def _choose_batch_block(batch, c_in, n_pad, itemsize,
                        io_budget_bytes=12 * 1024 * 1024):
    """Largest divisor of `batch` whose double-buffered in+out tile fits the
    budget, keeping grid length >= 2 (v7x megacore) whenever batch >= 2."""
    per_elem = 4 * c_in * n_pad * itemsize            # in + out, double-buffered
    best = 1
    for blk in range(1, batch + 1):
        if batch % blk:
            continue
        if blk * per_elem > io_budget_bytes:
            break
        if batch >= 2 and (batch // blk) < 2:
            continue
        best = blk
    return best


def lowrank_layer_global(x, w_head, w_tail, *, ranks=3, stage_num=1, eps=1e-6,
                         approx_recip=False):
    """Pallas-TPU forward of LowRankLayer_global (bias=False path).

    x: (B, C_in, H, W); w_head: (C_out, C_in); w_tail: (C_in, C_out).
    """
    B, C_in, H, W = x.shape
    C_out = w_head.shape[0]
    N = H * W
    # Lane-dense spatial axis: pad H*W up to a multiple of 128 (unmasked vst).
    N_pad = ((N + 127) // 128) * 128
    x_flat = x.reshape(B, C_in, N)
    if N_pad != N:
        x_flat = jnp.pad(x_flat, ((0, 0), (0, 0), (0, N_pad - N)))

    itemsize = jnp.dtype(x.dtype).itemsize
    B_blk = _choose_batch_block(B, C_in, N_pad, itemsize)
    grid = (B // B_blk,)

    kernel = functools.partial(
        _lowrank_kernel, ranks=ranks, stage_num=stage_num, eps=eps,
        n_true=N, batch_block=B_blk, approx_recip=approx_recip)

    w_itemsize = jnp.dtype(w_head.dtype).itemsize
    flops_per_elem = (
        2 * C_out * C_in * N_pad + C_out * N_pad                  # head conv+relu
        + stage_num * (4 * ranks * C_out * N_pad                  # U^T X, X V^T
                       + 4 * ranks * ranks * (C_out + N_pad))     # Grams + dens
        + 2 * C_in * C_out * ranks + 2 * ranks * C_in * N_pad     # folded tail
        + C_in * N_pad)                                           # residual add
    cost = pl.CostEstimate(
        flops=int(B * flops_per_elem),
        transcendentals=0,
        bytes_accessed=int(2 * B * C_in * N_pad * itemsize
                           + 2 * C_in * C_out * w_itemsize),
    )

    out_flat = pl.pallas_call(
        kernel,
        out_shape=jax.ShapeDtypeStruct((B, C_in, N_pad), x.dtype),
        grid_spec=pltpu.PrefetchScalarGridSpec(
            num_scalar_prefetch=0,
            grid=grid,
            in_specs=[
                pl.BlockSpec((B_blk, C_in, N_pad), lambda b: (b, 0, 0)),   # x
                pl.BlockSpec((C_out, C_in), lambda b: (0, 0)),   # head w (resident)
                pl.BlockSpec((C_in, C_out), lambda b: (0, 0)),   # tail w (resident)
            ],
            out_specs=pl.BlockSpec((B_blk, C_in, N_pad), lambda b: (b, 0, 0)),
        ),
        compiler_params=pltpu.CompilerParams(
            dimension_semantics=("parallel",),
            # Per-step footprint is sized by _choose_batch_block; 32 MiB scoped
            # limit stays well under v7x's 64 MiB physical VMEM and covers
            # v5e's 16 MiB default scoped budget.
            vmem_limit_bytes=32 * 1024 * 1024,
        ),
        cost_estimate=cost,
    )(x_flat, w_head, w_tail)

    if N_pad != N:
        out_flat = out_flat[:, :, :N]
    return out_flat.reshape(B, C_in, H, W)


def _reference(x, w_head, w_tail, *, ranks=3, stage_num=1, eps=1e-6):
    """Pure-JAX transcription of LowRankLayer_global.forward (f32)."""
    B, C_in, H, W = x.shape
    N = H * W
    # Scoped precision override (not process-global) so the reference matmuls
    # compare like-for-like with the kernel's exact-f32 MXU matmuls.
    with jax.default_matmul_precision("highest"):
        xf = x.astype(jnp.float32).reshape(B, C_in, N)
        whf = w_head.astype(jnp.float32)
        wtf = w_tail.astype(jnp.float32)

        X = jnp.maximum(jnp.einsum('oi,bin->bon', whf, xf), 0.0)           # (B,C,N)
        U = jnp.repeat(jnp.mean(X, axis=2, keepdims=True), ranks, axis=2)  # (B,C,R)
        V = jnp.repeat(jnp.mean(X, axis=1, keepdims=True), ranks, axis=1)  # (B,R,N)
        for _ in range(stage_num):
            num = jnp.einsum('bcr,bcn->brn', U, X)
            den = jnp.einsum('bcr,bcn->brn', U, jnp.einsum('bcr,brn->bcn', U, V))
            V = V * (num / (den + eps))
            num = jnp.einsum('bcn,brn->bcr', X, V)
            den = jnp.einsum('bcn,brn->bcr', jnp.einsum('bcr,brn->bcn', U, V), V)
            U = U * (num / (den + eps))
        UV = jnp.einsum('bcr,brn->bcn', U, V)
        out = jnp.einsum('io,bon->bin', wtf, UV) + xf
    return out.reshape(B, C_in, H, W).astype(x.dtype)


if __name__ == "__main__":
    key = jax.random.PRNGKey(0)
    B, C_in, C_out, H, W = 2, 8, 16, 16, 16      # N = H*W = 256 (multiple of 128)
    ranks, stage_num = 3, 1                      # module defaults

    kx, kh, kt = jax.random.split(key, 3)
    x = jax.random.normal(kx, (B, C_in, H, W), dtype=jnp.float32)

    # Conv2d(kernel_size=1, bias=False) weights squeezed to 2-D:
    # head: (C_out, C_in), tail: (C_in, C_out); PyTorch-style uniform bounds.
    bound_h = 1.0 / (C_in ** 0.5)
    w_head = jax.random.uniform(kh, (C_out, C_in), jnp.float32, -bound_h, bound_h)
    bound_t = 1.0 / (C_out ** 0.5)
    w_tail = jax.random.uniform(kt, (C_in, C_out), jnp.float32, -bound_t, bound_t)

    out = lowrank_layer_global(x, w_head, w_tail,
                               ranks=ranks, stage_num=stage_num, eps=1e-6)
    jax.block_until_ready(out)

    ref = _reference(x, w_head, w_tail, ranks=ranks, stage_num=stage_num, eps=1e-6)
    assert out.shape == (B, C_in, H, W)
    assert jnp.allclose(out, ref, atol=1e-4, rtol=1e-4), "mismatch vs reference"

    print("KERNEL_OK")
</pallas_src>

<mosaic_0001>
module attributes {stable_mosaic.version = 11 : i64} {
  func.func @_lowrank_kernel(%arg0: i32, %arg1: memref<1x8x256xf32, #tpu.memory_space<vmem>>, %arg2: memref<16x8xf32, #tpu.memory_space<vmem>>, %arg3: memref<8x16xf32, #tpu.memory_space<vmem>>, %arg4: memref<1x8x256xf32, #tpu.memory_space<vmem>>) attributes {dimension_semantics = [#tpu.dimension_semantics<parallel>], iteration_bounds = array<i64: 2>, scalar_prefetch = 0 : i64, scratch_operands = 0 : i64, tpu.core_type = #tpu.core_type<tc>, window_params = [{transform_indices = @transform_0, window_bounds = array<i64: 1, 8, 256>}, {pipeline_mode = #tpu.pipeline_mode<synchronous>, transform_indices = @transform_1, window_bounds = array<i64: 16, 8>}, {pipeline_mode = #tpu.pipeline_mode<synchronous>, transform_indices = @transform_2, window_bounds = array<i64: 8, 16>}, {transform_indices = @transform_3, window_bounds = array<i64: 1, 8, 256>}]} {
    %c0 = arith.constant 0 : index
    %c0_0 = arith.constant 0 : index
    %0 = vector.load %arg2[%c0, %c0_0] : memref<16x8xf32, #tpu.memory_space<vmem>>, vector<16x8xf32>
    %c0_1 = arith.constant 0 : index
    %c0_2 = arith.constant 0 : index
    %1 = vector.load %arg3[%c0_1, %c0_2] : memref<8x16xf32, #tpu.memory_space<vmem>>, vector<8x16xf32>
    %2 = tpu.iota {dimensions = array<i32: 1>} : vector<16x3xi32>
    %c0_3 = arith.constant 0 : index
    %c0_4 = arith.constant 0 : index
    %c0_5 = arith.constant 0 : index
    %3 = vector.load %arg1[%c0_3, %c0_4, %c0_5] : memref<1x8x256xf32, #tpu.memory_space<vmem>>, vector<1x8x256xf32>
    %4 = vector.shape_cast %3 : vector<1x8x256xf32> to vector<8x256xf32>
    %cst = arith.constant dense<0.000000e+00> : vector<16x256xf32>
    %5 = tpu.matmul %0, %4, %cst {dimension_numbers = #tpu.dot_dimension_numbers<[1], [0], [0], [1], [0, 0, 1, 1], [], []>, precision = #tpu.contract_precision<fp32>} : vector<16x8xf32>, vector<8x256xf32>, vector<16x256xf32> -> vector<16x256xf32>
    %cst_6 = arith.constant 0.000000e+00 : f32
    %6 = vector.broadcast %cst_6 : f32 to vector<16x256xf32>
    %7 = arith.maximumf %5, %6 : vector<16x256xf32>
    %cst_7 = arith.constant dense<0.000000e+00> : vector<16xf32>
    %8 = vector.multi_reduction <add>, %7, %cst_7 [1] : vector<16x256xf32> to vector<16xf32>
    %9 = vector.shape_cast %8 : vector<16xf32> to vector<16x1xf32>
    %cst_8 = arith.constant 3.906250e-03 : f32
    %10 = vector.broadcast %cst_8 : f32 to vector<16x1xf32>
    %11 = arith.mulf %9, %10 : vector<16x1xf32>
    %cst_9 = arith.constant dense<0.000000e+00> : vector<256xf32>
    %12 = vector.multi_reduction <add>, %7, %cst_9 [0] : vector<16x256xf32> to vector<256xf32>
    %13 = vector.shape_cast %12 : vector<256xf32> to vector<1x256xf32>
    %cst_10 = arith.constant 1.600000e+01 : f32
    %14 = vector.broadcast %cst_10 : f32 to vector<1x256xf32>
    %15 = arith.divf %13, %14 : vector<1x256xf32>
    %16 = arith.mulf %11, %11 : vector<16x1xf32>
    %cst_11 = arith.constant dense<0.000000e+00> : vector<1xf32>
    %17 = vector.multi_reduction <add>, %16, %cst_11 [0] : vector<16x1xf32> to vector<1xf32>
    %18 = vector.shape_cast %17 : vector<1xf32> to vector<1x1xf32>
    %19 = arith.mulf %11, %11 : vector<16x1xf32>
    %cst_12 = arith.constant dense<0.000000e+00> : vector<1xf32>
    %20 = vector.multi_reduction <add>, %19, %cst_12 [0] : vector<16x1xf32> to vector<1xf32>
    %21 = vector.shape_cast %20 : vector<1xf32> to vector<1x1xf32>
    %22 = arith.mulf %11, %11 : vector<16x1xf32>
    %cst_13 = arith.constant dense<0.000000e+00> : vector<1xf32>
    %23 = vector.multi_reduction <add>, %22, %cst_13 [0] : vector<16x1xf32> to vector<1xf32>
    %24 = vector.shape_cast %23 : vector<1xf32> to vector<1x1xf32>
    %25 = arith.mulf %11, %11 : vector<16x1xf32>
    %cst_14 = arith.constant dense<0.000000e+00> : vector<1xf32>
    %26 = vector.multi_reduction <add>, %25, %cst_14 [0] : vector<16x1xf32> to vector<1xf32>
    %27 = vector.shape_cast %26 : vector<1xf32> to vector<1x1xf32>
    %28 = arith.mulf %11, %11 : vector<16x1xf32>
    %cst_15 = arith.constant dense<0.000000e+00> : vector<1xf32>
    %29 = vector.multi_reduction <add>, %28, %cst_15 [0] : vector<16x1xf32> to vector<1xf32>
    %30 = vector.shape_cast %29 : vector<1xf32> to vector<1x1xf32>
    %31 = arith.mulf %11, %11 : vector<16x1xf32>
    %cst_16 = arith.constant dense<0.000000e+00> : vector<1xf32>
    %32 = vector.multi_reduction <add>, %31, %cst_16 [0] : vector<16x1xf32> to vector<1xf32>
    %33 = vector.shape_cast %32 : vector<1xf32> to vector<1x1xf32>
    %34 = vector.broadcast %11 : vector<16x1xf32> to vector<16x256xf32>
    %35 = arith.mulf %34, %7 : vector<16x256xf32>
    %cst_17 = arith.constant dense<0.000000e+00> : vector<256xf32>
    %36 = vector.multi_reduction <add>, %35, %cst_17 [0] : vector<16x256xf32> to vector<256xf32>
    %37 = vector.shape_cast %36 : vector<256xf32> to vector<1x256xf32>
    %38 = vector.broadcast %18 : vector<1x1xf32> to vector<1x256xf32>
    %39 = arith.mulf %38, %15 : vector<1x256xf32>
    %40 = vector.broadcast %21 : vector<1x1xf32> to vector<1x256xf32>
    %41 = arith.mulf %40, %15 : vector<1x256xf32>
    %42 = arith.addf %39, %41 : vector<1x256xf32>
    %43 = vector.broadcast %24 : vector<1x1xf32> to vector<1x256xf32>
    %44 = arith.mulf %43, %15 : vector<1x256xf32>
    %45 = arith.addf %42, %44 : vector<1x256xf32>
    %cst_18 = arith.constant 9.99999997E-7 : f32
    %46 = vector.broadcast %cst_18 : f32 to vector<1x256xf32>
    %47 = arith.addf %45, %46 : vector<1x256xf32>
    %48 = tpu.reciprocal %47 : vector<1x256xf32> -> vector<1x256xf32>
    %49 = arith.mulf %37, %48 : vector<1x256xf32>
    %50 = arith.mulf %15, %49 : vector<1x256xf32>
    %51 = vector.broadcast %11 : vector<16x1xf32> to vector<16x256xf32>
    %52 = arith.mulf %51, %7 : vector<16x256xf32>
    %cst_19 = arith.constant dense<0.000000e+00> : vector<256xf32>
    %53 = vector.multi_reduction <add>, %52, %cst_19 [0] : vector<16x256xf32> to vector<256xf32>
    %54 = vector.shape_cast %53 : vector<256xf32> to vector<1x256xf32>
    %55 = vector.broadcast %21 : vector<1x1xf32> to vector<1x256xf32>
    %56 = arith.mulf %55, %15 : vector<1x256xf32>
    %57 = vector.broadcast %27 : vector<1x1xf32> to vector<1x256xf32>
    %58 = arith.mulf %57, %15 : vector<1x256xf32>
    %59 = arith.addf %56, %58 : vector<1x256xf32>
    %60 = vector.broadcast %30 : vector<1x1xf32> to vector<1x256xf32>
    %61 = arith.mulf %60, %15 : vector<1x256xf32>
    %62 = arith.addf %59, %61 : vector<1x256xf32>
    %cst_20 = arith.constant 9.99999997E-7 : f32
    %63 = vector.broadcast %cst_20 : f32 to vector<1x256xf32>
    %64 = arith.addf %62, %63 : vector<1x256xf32>
    %65 = tpu.reciprocal %64 : vector<1x256xf32> -> vector<1x256xf32>
    %66 = arith.mulf %54, %65 : vector<1x256xf32>
    %67 = arith.mulf %15, %66 : vector<1x256xf32>
    %68 = vector.broadcast %11 : vector<16x1xf32> to vector<16x256xf32>
    %69 = arith.mulf %68, %7 : vector<16x256xf32>
    %cst_21 = arith.constant dense<0.000000e+00> : vector<256xf32>
    %70 = vector.multi_reduction <add>, %69, %cst_21 [0] : vector<16x256xf32> to vector<256xf32>
    %71 = vector.shape_cast %70 : vector<256xf32> to vector<1x256xf32>
    %72 = vector.broadcast %24 : vector<1x1xf32> to vector<1x256xf32>
    %73 = arith.mulf %72, %15 : vector<1x256xf32>
    %74 = vector.broadcast %30 : vector<1x1xf32> to vector<1x256xf32>
    %75 = arith.mulf %74, %15 : vector<1x256xf32>
    %76 = arith.addf %73, %75 : vector<1x256xf32>
    %77 = vector.broadcast %33 : vector<1x1xf32> to vector<1x256xf32>
    %78 = arith.mulf %77, %15 : vector<1x256xf32>
    %79 = arith.addf %76, %78 : vector<1x256xf32>
    %cst_22 = arith.constant 9.99999997E-7 : f32
    %80 = vector.broadcast %cst_22 : f32 to vector<1x256xf32>
    %81 = arith.addf %79, %80 : vector<1x256xf32>
    %82 = tpu.reciprocal %81 : vector<1x256xf32> -> vector<1x256xf32>
    %83 = arith.mulf %71, %82 : vector<1x256xf32>
    %84 = arith.mulf %15, %83 : vector<1x256xf32>
    %85 = arith.mulf %50, %50 : vector<1x256xf32>
    %cst_23 = arith.constant dense<0.000000e+00> : vector<1xf32>
    %86 = vector.multi_reduction <add>, %85, %cst_23 [1] : vector<1x256xf32> to vector<1xf32>
    %87 = vector.shape_cast %86 : vector<1xf32> to vector<1x1xf32>
    %88 = arith.mulf %50, %67 : vector<1x256xf32>
    %cst_24 = arith.constant dense<0.000000e+00> : vector<1xf32>
    %89 = vector.multi_reduction <add>, %88, %cst_24 [1] : vector<1x256xf32> to vector<1xf32>
    %90 = vector.shape_cast %89 : vector<1xf32> to vector<1x1xf32>
    %91 = arith.mulf %50, %84 : vector<1x256xf32>
    %cst_25 = arith.constant dense<0.000000e+00> : vector<1xf32>
    %92 = vector.multi_reduction <add>, %91, %cst_25 [1] : vector<1x256xf32> to vector<1xf32>
    %93 = vector.shape_cast %92 : vector<1xf32> to vector<1x1xf32>
    %94 = arith.mulf %67, %67 : vector<1x256xf32>
    %cst_26 = arith.constant dense<0.000000e+00> : vector<1xf32>
    %95 = vector.multi_reduction <add>, %94, %cst_26 [1] : vector<1x256xf32> to vector<1xf32>
    %96 = vector.shape_cast %95 : vector<1xf32> to vector<1x1xf32>
    %97 = arith.mulf %67, %84 : vector<1x256xf32>
    %cst_27 = arith.constant dense<0.000000e+00> : vector<1xf32>
    %98 = vector.multi_reduction <add>, %97, %cst_27 [1] : vector<1x256xf32> to vector<1xf32>
    %99 = vector.shape_cast %98 : vector<1xf32> to vector<1x1xf32>
    %100 = arith.mulf %84, %84 : vector<1x256xf32>
    %cst_28 = arith.constant dense<0.000000e+00> : vector<1xf32>
    %101 = vector.multi_reduction <add>, %100, %cst_28 [1] : vector<1x256xf32> to vector<1xf32>
    %102 = vector.shape_cast %101 : vector<1xf32> to vector<1x1xf32>
    %103 = vector.broadcast %50 : vector<1x256xf32> to vector<16x256xf32>
    %104 = arith.mulf %7, %103 : vector<16x256xf32>
    %cst_29 = arith.constant dense<0.000000e+00> : vector<16xf32>
    %105 = vector.multi_reduction <add>, %104, %cst_29 [1] : vector<16x256xf32> to vector<16xf32>
    %106 = vector.shape_cast %105 : vector<16xf32> to vector<16x1xf32>
    %107 = vector.broadcast %87 : vector<1x1xf32> to vector<16x1xf32>
    %108 = arith.mulf %107, %11 : vector<16x1xf32>
    %109 = vector.broadcast %90 : vector<1x1xf32> to vector<16x1xf32>
    %110 = arith.mulf %109, %11 : vector<16x1xf32>
    %111 = arith.addf %108, %110 : vector<16x1xf32>
    %112 = vector.broadcast %93 : vector<1x1xf32> to vector<16x1xf32>
    %113 = arith.mulf %112, %11 : vector<16x1xf32>
    %114 = arith.addf %111, %113 : vector<16x1xf32>
    %cst_30 = arith.constant 9.99999997E-7 : f32
    %115 = vector.broadcast %cst_30 : f32 to vector<16x1xf32>
    %116 = arith.addf %114, %115 : vector<16x1xf32>
    %117 = tpu.reciprocal %116 : vector<16x1xf32> -> vector<16x1xf32>
    %118 = arith.mulf %106, %117 : vector<16x1xf32>
    %119 = arith.mulf %11, %118 : vector<16x1xf32>
    %120 = vector.broadcast %67 : vector<1x256xf32> to vector<16x256xf32>
    %121 = arith.mulf %7, %120 : vector<16x256xf32>
    %cst_31 = arith.constant dense<0.000000e+00> : vector<16xf32>
    %122 = vector.multi_reduction <add>, %121, %cst_31 [1] : vector<16x256xf32> to vector<16xf32>
    %123 = vector.shape_cast %122 : vector<16xf32> to vector<16x1xf32>
    %124 = vector.broadcast %90 : vector<1x1xf32> to vector<16x1xf32>
    %125 = arith.mulf %124, %11 : vector<16x1xf32>
    %126 = vector.broadcast %96 : vector<1x1xf32> to vector<16x1xf32>
    %127 = arith.mulf %126, %11 : vector<16x1xf32>
    %128 = arith.addf %125, %127 : vector<16x1xf32>
    %129 = vector.broadcast %99 : vector<1x1xf32> to vector<16x1xf32>
    %130 = arith.mulf %129, %11 : vector<16x1xf32>
    %131 = arith.addf %128, %130 : vector<16x1xf32>
    %cst_32 = arith.constant 9.99999997E-7 : f32
    %132 = vector.broadcast %cst_32 : f32 to vector<16x1xf32>
    %133 = arith.addf %131, %132 : vector<16x1xf32>
    %134 = tpu.reciprocal %133 : vector<16x1xf32> -> vector<16x1xf32>
    %135 = arith.mulf %123, %134 : vector<16x1xf32>
    %136 = arith.mulf %11, %135 : vector<16x1xf32>
    %137 = vector.broadcast %84 : vector<1x256xf32> to vector<16x256xf32>
    %138 = arith.mulf %7, %137 : vector<16x256xf32>
    %cst_33 = arith.constant dense<0.000000e+00> : vector<16xf32>
    %139 = vector.multi_reduction <add>, %138, %cst_33 [1] : vector<16x256xf32> to vector<16xf32>
    %140 = vector.shape_cast %139 : vector<16xf32> to vector<16x1xf32>
    %141 = vector.broadcast %93 : vector<1x1xf32> to vector<16x1xf32>
    %142 = arith.mulf %141, %11 : vector<16x1xf32>
    %143 = vector.broadcast %99 : vector<1x1xf32> to vector<16x1xf32>
    %144 = arith.mulf %143, %11 : vector<16x1xf32>
    %145 = arith.addf %142, %144 : vector<16x1xf32>
    %146 = vector.broadcast %102 : vector<1x1xf32> to vector<16x1xf32>
    %147 = arith.mulf %146, %11 : vector<16x1xf32>
    %148 = arith.addf %145, %147 : vector<16x1xf32>
    %cst_34 = arith.constant 9.99999997E-7 : f32
    %149 = vector.broadcast %cst_34 : f32 to vector<16x1xf32>
    %150 = arith.addf %148, %149 : vector<16x1xf32>
    %151 = tpu.reciprocal %150 : vector<16x1xf32> -> vector<16x1xf32>
    %152 = arith.mulf %140, %151 : vector<16x1xf32>
    %153 = arith.mulf %11, %152 : vector<16x1xf32>
    %c0_i32 = arith.constant 0 : i32
    %154 = vector.broadcast %c0_i32 : i32 to vector<16x3xi32>
    %155 = arith.cmpi eq, %2, %154 : vector<16x3xi32>
    %cst_35 = arith.constant 0.000000e+00 : f32
    %156 = vector.shape_cast %119 : vector<16x1xf32> to vector<16x1xf32>
    %157 = vector.broadcast %156 : vector<16x1xf32> to vector<16x3xf32>
    %158 = vector.broadcast %cst_35 : f32 to vector<16x3xf32>
    %159 = arith.select %155, %157, %158 : vector<16x3xi1>, vector<16x3xf32>
    %c1_i32 = arith.constant 1 : i32
    %160 = vector.broadcast %c1_i32 : i32 to vector<16x3xi32>
    %161 = arith.cmpi eq, %2, %160 : vector<16x3xi32>
    %162 = vector.shape_cast %136 : vector<16x1xf32> to vector<16x1xf32>
    %163 = vector.broadcast %162 : vector<16x1xf32> to vector<16x3xf32>
    %164 = arith.select %161, %163, %159 : vector<16x3xi1>, vector<16x3xf32>
    %c2_i32 = arith.constant 2 : i32
    %165 = vector.broadcast %c2_i32 : i32 to vector<16x3xi32>
    %166 = arith.cmpi eq, %2, %165 : vector<16x3xi32>
    %167 = vector.shape_cast %153 : vector<16x1xf32> to vector<16x1xf32>
    %168 = vector.broadcast %167 : vector<16x1xf32> to vector<16x3xf32>
    %169 = arith.select %166, %168, %164 : vector<16x3xi1>, vector<16x3xf32>
    %cst_36 = arith.constant dense<0.000000e+00> : vector<8x3xf32>
    %170 = tpu.matmul %1, %169, %cst_36 {dimension_numbers = #tpu.dot_dimension_numbers<[1], [0], [0], [1], [0, 0, 1, 1], [], []>, precision = #tpu.contract_precision<fp32>} : vector<8x16xf32>, vector<16x3xf32>, vector<8x3xf32> -> vector<8x3xf32>
    %171 = vector.extract_strided_slice %170 {offsets = [0, 0], sizes = [8, 1], strides = [1, 1]} : vector<8x3xf32> to vector<8x1xf32>
    %172 = vector.broadcast %171 : vector<8x1xf32> to vector<8x256xf32>
    %173 = vector.broadcast %50 : vector<1x256xf32> to vector<8x256xf32>
    %174 = arith.mulf %172, %173 : vector<8x256xf32>
    %175 = vector.extract_strided_slice %170 {offsets = [0, 1], sizes = [8, 1], strides = [1, 1]} : vector<8x3xf32> to vector<8x1xf32>
    %176 = vector.broadcast %175 : vector<8x1xf32> to vector<8x256xf32>
    %177 = vector.broadcast %67 : vector<1x256xf32> to vector<8x256xf32>
    %178 = arith.mulf %176, %177 : vector<8x256xf32>
    %179 = arith.addf %174, %178 : vector<8x256xf32>
    %180 = vector.extract_strided_slice %170 {offsets = [0, 2], sizes = [8, 1], strides = [1, 1]} : vector<8x3xf32> to vector<8x1xf32>
    %181 = vector.broadcast %180 : vector<8x1xf32> to vector<8x256xf32>
    %182 = vector.broadcast %84 : vector<1x256xf32> to vector<8x256xf32>
    %183 = arith.mulf %181, %182 : vector<8x256xf32>
    %184 = arith.addf %179, %183 : vector<8x256xf32>
    %185 = arith.addf %184, %4 : vector<8x256xf32>
    %c0_37 = arith.constant 0 : index
    %c0_38 = arith.constant 0 : index
    %c0_39 = arith.constant 0 : index
    %186 = vector.load %arg4[%c0_37, %c0_38, %c0_39] : memref<1x8x256xf32, #tpu.memory_space<vmem>>, vector<1x8x256xf32>
    %187 = vector.shape_cast %186 : vector<1x8x256xf32> to vector<8x256xf32>
    %188 = vector.shape_cast %185 : vector<8x256xf32> to vector<1x8x256xf32>
    tpu.vector_store %arg4[%c0_37, %c0_38, %c0_39], %188 {strides = array<i32>} : memref<1x8x256xf32, #tpu.memory_space<vmem>>, vector<1x8x256xf32>,
    return
  }
  func.func @transform_0(%arg0: i32) -> (i32, i32, i32) {
    %c0_i32 = arith.constant 0 : i32
    %c0_i32_0 = arith.constant 0 : i32
    %c0_i32_1 = arith.constant 0 : i32
    return %arg0, %c0_i32, %c0_i32_0 : i32, i32, i32
  }
  func.func @transform_1(%arg0: i32) -> (i32, i32) {
    %c0_i32 = arith.constant 0 : i32
    %c0_i32_0 = arith.constant 0 : i32
    %c0_i32_1 = arith.constant 0 : i32
    return %c0_i32, %c0_i32_0 : i32, i32
  }
  func.func @transform_2(%arg0: i32) -> (i32, i32) {
    %c0_i32 = arith.constant 0 : i32
    %c0_i32_0 = arith.constant 0 : i32
    %c0_i32_1 = arith.constant 0 : i32
    return %c0_i32, %c0_i32_0 : i32, i32
  }
  func.func @transform_3(%arg0: i32) -> (i32, i32, i32) {
    %c0_i32 = arith.constant 0 : i32
    %c0_i32_0 = arith.constant 0 : i32
    %c0_i32_1 = arith.constant 0 : i32
    return %arg0, %c0_i32, %c0_i32_0 : i32, i32, i32
  }
}

</mosaic_0001>

<bundles_post_ra>
// kernel: tpu_custom_call.1
= control target key start
LH: loop header
LB: loop body
LE: loop exit
PB: predicated region body
PF: predicated region fallthrough
CT: control target
= control target key end

     0   :  { %8 = vsyncpa [#allocation3], 0  ;;  %s1416_s0 = inlined_call_operand.hbm [shape: f32[2,8,256], index: 0, kind: input, shape index: {}]   ;;  %s1417_s1 = inlined_call_operand.vmem [shape: f32[16,8], index: 1, kind: input, shape index: {}]   ;;  %s1418_s2 = inlined_call_operand.vmem [shape: f32[8,16], index: 2, kind: input, shape index: {}]   ;;  %s1419_s3 = inlined_call_operand.hbm [shape: f32[2,8,256], index: 3, kind: output, shape index: {}]  }
   0x1   :  { %10 = vsyncpa [#allocation3 + $0x1], 0 }
   0x2   :  { %11 = vsyncpa [#allocation4], 0 }
   0x3   :  { %13 = vsyncpa [#allocation4 + $0x1], 0  ;;  %s1202_s12 = smov 0   ;;  %s1204_s13 = smov 0  }
   0x4   :  { %s1206_s14 = smov 0   ;;  %s1208_s15 = smov 0  }
   0x5 LB: > { %s1223_s16 = sadd.s32 4294967295, %s1176_s15   ;;  %s1000_s17 = sadd.s32 4294967294, %s1176_s15   ;;  %s1176_s15 = sphi %s1208_s15, %s1429_s15   ;;  %s1172_s14 = sphi %s1206_s14, %s1428_s14   ;;  %s1168_s13 = sphi %s1204_s13, %s1427_s13   ;;  %s1164_s12 = sphi %s1202_s12, %s1426_s12  }
   0x6   : > { %s1227_s18 = sadd.s32 1, %s1176_s15   ;;  %s26_s19 = sadd.s32 1, %s1172_s14 }
   0x7   : > { %s23_s20 = ssub.s32 %s1176_s15, %s1227_s18  ;;  %p33_p0 = scmp.ne.s32.totalorder %s1172_s14, %s1168_s13 }
   0x8   : > { %p24_p1 = scmp.eq.s32.totalorder %s23_s20, 0  ;;  %p34_p2 = scmp.eq.s32.totalorder %s1176_s15, 0 }
   0x9   : > { %p39_p3 = scmp.ne.s32.totalorder %s1168_s13, %s1164_s12  ;;  %p40_p4 = scmp.eq.s32.totalorder %s1223_s16, 0 }
   0xa   : > { %s1239_s21 = scalar_select %p24_p1, %s1172_s14, %s26_s19  }
   0xb   : > { %p1241_p5 = por %p34_p2, %p33_p0  ;;  %p1245_p6 = por %p40_p4, %p39_p3 }
   0xc   : > { %p105_p7 = scmp.eq.s32.totalorder %s1223_s16, 1  ;;  %p111_p8 = scmp.eq.s32.totalorder %s1000_s17, 1 }
   0xd   : > { %p1028_p10 = scmp.lt.s32.totalorder %s1176_s15, 2  ;;  %s137_s26 = sand.u32 1, %s1172_s14  }
   0xe   : > { %p1252_p11 = por %p105_p7, %p33_p0  ;;  %p1256_p12 = por %p111_p8, %p39_p3 }
   0xf   : > { %s1014_s27 = sshll.u32 %s1176_s15, 4  ;;  %s1003_s28 = sshll.u32 %s137_s26, 4 }
  0x10   : > { %s146_s4 = scalar_lea.hbm %s1416_s0, %s1014_s27  ;;  %s141_s6 = scalar_lea.vmem [#allocation2], %s1003_s28 }
  0x11   : > { %s148_s5 = sshll.u32 %s146_s4, 4  ;;  %s150_s7 = sshll.u32 %s141_s6, 4  ;;  %s149_s5 = int_to_ptr.hbm [resolvable:$true] %s148_s5  ;;  %s151_s7 = int_to_ptr.vmem [resolvable:$true] %s150_s7 }
  0x12   : > { %p1267_p13 = pnand %p1028_p10, %p1241_p5  ;;  %p1006_p0 = scmp.ge.s32.totalorder %s1176_s15, 1 }
  0x13   : > { %p155_p1 = scmp.lt.s32.totalorder %s1176_s15, 3  ;;  %s138_s9 = scalar_lea.sflag [#allocation3], %s137_s26 }
  0x14   : > { %s1080_s10 = sshra.s32 %s149_s5, 4  ;;  %p1084_p3 = pneg %p1267_p13  ;;  %s1081_s10 = int_to_ptr.hbm [resolvable:$true] %s1080_s10 }
  0x15   : > { %s1082_s11 = scalar_lea.hbm %s1081_s10, 16  ;;  %s1087_s20 = scalar_lea.hbm %s1416_s0, 32 }
  0x16   : > { %p1083_p2 = scmp.ne.s32.totalorder %s1081_s10, %s1082_s11  ;;  %p1088_p5 = scmp.lt.s32.totalorder %s1081_s10, %s1416_s0 }
  0x17   : > { %p1089_p8 = scmp.lt.s32.totalorder %s1087_s20, %s1082_s11 }
  0x18   : > { %p1085_p4 = pnand %p1084_p3, %p1083_p2 }
  0x19   : > { %p1090_p10 = por %p1089_p8, %p1088_p5 }
  0x1a   : > { %p1086_p7 = pneg %p1085_p4 }
  0x1c   : > { %p1091_p9 = pnand %p1090_p10, %p1086_p7 }
  0x1e   : > { %1094 = shalt.err (!%p1091_p9)
}
  0x1f   : > { %1023 = dma.hbm_to_vmem [thread:$0]  (!%p1267_p13), %s149_s5, 256, %s151_s7, %s138_s9  }
  0x20   : > { %p156_p2 = pnand %p1006_p0, %p155_p1 }
  0x21   : > { %s1288_s26 = sand.u32 (!%p156_p2), 1, %s1168_s13  }
  0x22   : > { %159 = sbr.rel (%p156_p2) target bundleno = 824 (0x338), region = 32  ;;  %s1007_s28 = sshll.u32 (!%p156_p2), %s1288_s26, 4 }
  0x23   : > { %s162_s29 = scalar_lea.sflag (!%p156_p2), [#allocation3], %s1288_s26  ;;  %s165_s30 = scalar_lea.vmem (!%p156_p2), [#allocation2], %s1007_s28 }
  0x27   : > { %1155 = dma.done.wait (%p1245_p6), %s162_s29, 256  }
  0x28   : > { %1157 = vsyncadd (%p1245_p6), %s162_s29, 4294967040  ;;  %vm196_vm0 = vcmask 64512   ;;  %v1298_v0 = vld [vmem:[%s165_s30] sm:$0xff]  ;;  %v190_v2 = vld [vmem:[%s1417_s1 + $0x8] sm:$0xff]  ;;  %vm723_vm10 = vcmask 130048   ;;  %s1015_s9 = sshll.u32 %s1223_s16, 4 }
  0x29   : > { %v189_v1 = vld [vmem:[%s1417_s1] sm:$0xff]  ;;  %v218_v3 = vand.u32 4294901760, %v1298_v0  ;;  %v201_v5 = vsel %vm196_vm0, %v190_v2, 0  ;;  %v1307_v6 = vld [vmem:[%s165_s30 + $0x8] sm:$0xff]  ;;  %s925_s17 = scalar_lea.hbm %s1419_s3, %s1015_s9  ;;  %s188_s16 = scalar_lea.vmem [#allocation5], %s1007_s28 }
  0x2a   : > { %v198_v4 = vsel %vm196_vm0, %v189_v1, 0  ;;  %v228_v8 = vand.u32 4294901760, %v201_v5  ;;  %v395_v9 = vand.u32 4294901760, %v1307_v6  ;;  %s927_s19 = sshll.u32 %s188_s16, 4  ;;  %s929_s20 = sshll.u32 %s925_s17, 4  ;;  %s928_s19 = int_to_ptr.vmem [resolvable:$true] %s927_s19  ;;  %s930_s20 = int_to_ptr.hbm [resolvable:$true] %s929_s20 }
  0x2b   : > { %v220_v7 = vand.u32 4294901760, %v198_v4  ;;  %v253_v10 = vsub.f32 %v1298_v0, %v218_v3  ;;  %312 = vmatpush.msra.mxu3 %v218_v3  ;;  %219 = vmatpush.msra.mxu0 %v218_v3  ;;  %s914_s22 = scalar_lea.sflag [#allocation4], %s1288_s26  ;;  %s1124_s27 = sshra.s32 %s930_s20, 4  ;;  %s1125_s27 = int_to_ptr.hbm [resolvable:$true] %s1124_s27 }
  0x2c   : > { %v229_v12 = vsub.f32 %v201_v5, %v228_v8  ;;  %v430_v13 = vsub.f32 %v1307_v6, %v395_v9  ;;  %s1126_s29 = scalar_lea.hbm %s1125_s27, 16  ;;  %s1130_s4 = scalar_lea.hbm %s1419_s3, 32 }
  0x2d   : > { %v221_v11 = vsub.f32 %v198_v4, %v220_v7  ;;  %284 = vmatpush.msra.mxu2 %v253_v10  ;;  %v254_v14 = vand.u32 4294901760, %v253_v10  ;;  %p1127_p6 = scmp.ne.s32.totalorder %s1125_s27, %s1126_s29  ;;  %p1131_p0 = scmp.lt.s32.totalorder %s1125_s27, %s1419_s3 }
  0x2e   : > { %v431_v16 = vand.u32 4294901760, %v430_v13  ;;  %v230_v19 = vand.u32 4294901760, %v229_v12  ;;  %p1132_p1 = scmp.lt.s32.totalorder %s1130_s4, %s1126_s29 }
  0x2f   : > { %287 = vmatmul.f32.vlgmr.msra.gmra.mxu2 %v221_v11  ;;  %v222_v15 = vand.u32 4294901760, %v221_v11  ;;  %v255_v17 = vsub.f32 %v253_v10, %v254_v14  ;;  %344 = vmatpush.msrb.mxu0 %v254_v14  ;;  %p1128_p9 = pnand %p1127_p6, %p1252_p11 }
  0x30   : > { %396 = vmatpush.msrb.mxu2 %v395_v9  ;;  %v432_v20 = vsub.f32 %v430_v13, %v431_v16  ;;  %v231_v24 = vsub.f32 %v229_v12, %v230_v19  ;;  %p1133_p3 = por %p1132_p1, %p1131_p0 }
  0x31   : > { %316 = vmatmul.f32.vlgmr.msra.gmra.mxu3 %v222_v15  ;;  %v223_v18 = vsub.f32 %v221_v11, %v222_v15  ;;  %v256_v21 = vand.u32 4294901760, %v255_v17  ;;  %p1129_p13 = pneg %p1128_p9 }
  0x32   : > { %521 = vmatpush.msra.mxu2 %v431_v16  ;;  %v433_v23 = vand.u32 4294901760, %v432_v20  ;;  %v232_v25 = vand.u32 4294901760, %v231_v24 }
  0x33   : > { %v224_v22 = vand.u32 4294901760, %v223_v18  ;;  %257 = vmatpush.msra.mxu1 %v256_v21  ;;  %p1134_p4 = pnand %p1133_p3, %p1129_p13 }
  0x34   : > { %259 = vmatmul.f32.vlgmr.msra.gmra.mxu1 %v220_v7  ;;  %434 = vmatpush.msrb.mxu3 %v433_v23 }
  0x35   : > { %225 = vmatmul.f32.vlgmr.msra.gmra.mxu0 %v224_v22  ;;  %370 = vmatpush.msrb.mxu1 %v218_v3 }
  0x36   : > { %461 = vmatpush.msra.mxu0 %v430_v13  ;;  %547 = vmatpush.msra.mxu3 %v395_v9 }
  0x37   : > { %292 = vmatmul.f32.gmra.mxu2 %v229_v12  ;;  %489 = vmatpush.msra.mxu1 %v395_v9 }
  0x39   : > { %322 = vmatmul.f32.gmra.mxu3 %v230_v19 }
  0x3c   : > { %263 = vmatmul.f32.gmra.mxu1 %v228_v8 }
  0x3d   : > { %233 = vmatmul.f32.gmra.mxu0 %v232_v25 }
  0x3f   : > { %402 = vmatmul.f32.vlgmr.msrb.gmra.mxu2 %v224_v22 }
  0x41   : > { %436 = vmatmul.f32.vlgmr.msrb.gmra.mxu3 %v220_v7 }
  0x44   : > { %372 = vmatmul.f32.vlgmr.msrb.gmra.mxu1 %v220_v7 }
  0x45   : > { %346 = vmatmul.f32.vlgmr.msrb.gmra.mxu0 %v220_v7 }
  0x47   : > { %410 = vmatmul.f32.gmra.mxu2 %v232_v25 }
  0x49   : > { %440 = vmatmul.f32.gmra.mxu3 %v228_v8 }
  0x4c   : > { %376 = vmatmul.f32.gmra.mxu1 %v228_v8 }
  0x4d   : > { %350 = vmatmul.f32.gmra.mxu0 %v228_v8 }
  0x4f   : > { %523 = vmatmul.f32.vlgmr.msra.gmra.mxu2 %v220_v7 }
  0x51   : > { %549 = vmatmul.f32.vlgmr.msra.gmra.mxu3 %v220_v7 }
  0x54   : > { %493 = vmatmul.f32.vlgmr.msra.gmra.mxu1 %v222_v15  ;;  %v1178_v15 = vmov 16.0  }
  0x55   : > { %464 = vmatmul.f32.vlgmr.msra.gmra.mxu0 %v221_v11  ;;  %1070 = vrcp.f32 %v1178_v15 }
  0x57   : > { %527 = vmatmul.f32.gmra.mxu2 %v228_v8 }
  0x59   : > { %553 = vmatmul.f32.gmra.mxu3 %v228_v8 }
  0x5b   : > { %v1071_v20 = vpop.eup %1070 }
  0x5c   : > { %499 = vmatmul.f32.gmra.mxu1 %v230_v19  ;;  %v584_v22 = vmul.f32 16.0, %v1071_v20  ;;  %vm588_vm1 = vweird.f32 %v1071_v20 }
  0x5d   : > { %469 = vmatmul.f32.gmra.mxu0 %v229_v12 }
  0xb1   : > { %v260_v27 = vpop.f32.mrf.mxu1 }
  0xb2   : > { %v226_v26 = vpop.f32.mrf.mxu0  ;;  %v288_v28 = vpop.f32.mrf.mxu2 }
  0xb3   : > { %v261_v38 = vadd.f32 %v260_v27, %v226_v26  ;;  %v585_v27 = vsub.f32 1.0, %v584_v22 }
  0xb4   : > { %v317_v29 = vpop.f32.mrf.mxu3 }
  0xb5   : > { %v289_v43 = vadd.f32 %v288_v28, %v261_v38 }
  0xb7   : > { %v318_v44 = vadd.f32 %v317_v29, %v289_v43 }
  0xb9   : > { %v264_v31 = vpop.f32.mrf.mxu1 }
  0xba   : > { %v234_v30 = vpop.f32.mrf.mxu0  ;;  %v293_v32 = vpop.f32.mrf.mxu2 }
  0xbb   : > { %v265_v45 = vadd.f32 %v264_v31, %v234_v30 }
  0xbc   : > { %v323_v33 = vpop.f32.mrf.mxu3 }
  0xbd   : > { %v294_v53 = vadd.f32 %v293_v32, %v265_v45 }
  0xbf   : > { %v324_v57 = vadd.f32 %v323_v33, %v294_v53  ;;  %v586_v33 = vmul.f32 %v1071_v20, %v585_v27 }
  0xc1   : > { %v373_v35 = vpop.f32.mrf.mxu1  ;;  %v587_v38 = vadd.f32 %v1071_v20, %v586_v33 }
  0xc2   : > { %v347_v34 = vpop.f32.mrf.mxu0  ;;  %v403_v36 = vpop.f32.mrf.mxu2 }
  0xc3   : > { %v348_v49 = vadd.f32 %v347_v34, %v318_v44  ;;  %v589_v43 = vsel %vm588_vm1, %v1071_v20, %v587_v38 }
  0xc4   : > { %v437_v37 = vpop.f32.mrf.mxu3 }
  0xc5   : > { %v438_v46 = vadd.f32 %v437_v37, %v403_v36  ;;  %v374_v55 = vadd.f32 %v373_v35, %v348_v49 }
  0xc7   : > { %v1312_v62 = vmax.f32 %v374_v55, 0.0 }
  0xc9   : > { %v377_v40 = vpop.f32.mrf.mxu1 }
  0xca   : > { %v351_v39 = vpop.f32.mrf.mxu0  ;;  %v411_v41 = vpop.f32.mrf.mxu2 }
  0xcb   : > { %v352_v63 = vadd.f32 %v351_v39, %v324_v57 }
  0xcc   : > { %v441_v42 = vpop.f32.mrf.mxu3 }
  0xcd   : > { %v442_v58 = vadd.f32 %v441_v42, %v411_v41  ;;  %v378_v8 = vadd.f32 %v377_v40, %v352_v63 }
  0xcf   : > { %v1318_v11 = vmax.f32 %v378_v8, 0.0 }
  0xd1   : > { %v494_v48 = vpop.f32.mrf.mxu1  ;;  %v569_v14 = vadd.f32 %v1318_v11, %v1312_v62 }
  0xd2   : > { %v465_v47 = vpop.f32.mrf.mxu0  ;;  %v524_v51 = vpop.f32.mrf.mxu2 }
  0xd3   : > { %v466_v50 = vadd.f32 %v465_v47, %v438_v46  ;;  %v570_v17 = vrot.slane %v569_v14, 4 }
  0xd4   : > { %v550_v52 = vpop.f32.mrf.mxu3 }
  0xd5   : > { %v495_v54 = vadd.f32 %v494_v48, %v466_v50  ;;  %v571_v21 = vadd.f32 %v570_v17, %v569_v14 }
  0xd7   : > { %v525_v56 = vadd.f32 %v524_v51, %v495_v54  ;;  %v572_v25 = vrot.slane %v571_v21, 2 }
  0xd9   : > { %v551_v59 = vadd.f32 %v550_v52, %v525_v56  ;;  %v500_v61 = vpop.f32.mrf.mxu1  ;;  %v573_v32 = vadd.f32 %v572_v25, %v571_v21 }
  0xda   : > { %v470_v60 = vpop.f32.mrf.mxu0  ;;  %v528_v3 = vpop.f32.mrf.mxu2 }
  0xdb   : > { %v1314_v1 = vmax.f32 %v551_v59, 0.0  ;;  %v471_v2 = vadd.f32 %v470_v60, %v442_v58  ;;  %v574_v37 = vrot.slane %v573_v32, 1 }
  0xdc   : > { %v554_v7 = vpop.f32.mrf.mxu3 }
  0xdd   : > { %v501_v4 = vadd.f32 %v500_v61, %v471_v2  ;;  %v561_v5 = vadd.f32 %v1314_v1, %v1312_v62  ;;  %v575_v42 = vadd.f32 %v574_v37, %v573_v32 }
  0xdf   : > { %v529_v9 = vadd.f32 %v528_v3, %v501_v4  ;;  %562 = vadd.xlane.f32.xlu0 %v561_v5  ;;  %v590_v50 = vmul.f32 %v589_v43, %v575_v42 }
  0xe1   : > { %v555_v10 = vadd.f32 %v554_v7, %v529_v9 }
  0xe3   : > { %v1320_v12 = vmax.f32 %v555_v10, 0.0 }
  0xe5   : > { %v564_v13 = vadd.f32 %v1320_v12, %v1318_v11  ;;  %v576_v16 = vadd.f32 %v1320_v12, %v1314_v1 }
  0xe7   : > { %565 = vadd.xlane.f32.xlu0 %v564_v13  ;;  %v577_v19 = vrot.slane %v576_v16, 4 }
  0xe9   : > { %v578_v23 = vadd.f32 %v577_v19, %v576_v16 }
  0xeb   : > { %v579_v28 = vrot.slane %v578_v23, 2 }
  0xed   : > { %v580_v34 = vadd.f32 %v579_v28, %v578_v23 }
  0xef   : > { %v581_v39 = vrot.slane %v580_v34, 1 }
  0xf1   : > { %v582_v44 = vadd.f32 %v581_v39, %v580_v34 }
  0xf3   : > { %v591_v51 = vmul.f32 %v589_v43, %v582_v44 }
 0x152   : > { %v563_v18 = vpop.xlane.xlu0 %562 }
 0x153   : > { %v1328_v24 = vmul.f32 0.00390625, %v563_v18 }
 0x155   : > { %v592_v30 = vmul.f32 %v1328_v24, %v1328_v24  ;;  %v601_v47 = vmul.f32 %v1328_v24, %v1312_v62  ;;  %v602_v52 = vmul.f32 %v1328_v24, %v1314_v1 }
 0x15a   : > { %v566_v26 = vpop.xlane.xlu0 %565 }
 0x15b   : > { %v1330_v29 = vmul.f32 0.00390625, %v566_v26 }
 0x15d   : > { %v593_v31 = vmul.f32 %v1330_v29, %v1330_v29  ;;  %v603_v46 = vmul.f32 %v1330_v29, %v1318_v11  ;;  %v604_v49 = vmul.f32 %v1330_v29, %v1320_v12 }
 0x15f   : > { %v594_v35 = vadd.f32 %v593_v31, %v592_v30  ;;  %v605_v54 = vadd.f32 %v603_v46, %v601_v47  ;;  %v612_v55 = vadd.f32 %v604_v49, %v602_v52 }
 0x161   : > { %v595_v36 = vrot.slane %v594_v35, 4  ;;  %v606_v58 = vrot.slane %v605_v54, 4  ;;  %v613_v61 = vrot.slane %v612_v55, 4 }
 0x163   : > { %v596_v40 = vadd.f32 %v595_v36, %v594_v35  ;;  %v607_v3 = vadd.f32 %v606_v58, %v605_v54  ;;  %v614_v7 = vadd.f32 %v613_v61, %v612_v55 }
 0x165   : > { %v597_v41 = vrot.slane %v596_v40, 2  ;;  %v608_v8 = vrot.slane %v607_v3, 2  ;;  %v615_v9 = vrot.slane %v614_v7, 2 }
 0x167   : > { %v598_v45 = vadd.f32 %v597_v41, %v596_v40  ;;  %v609_v13 = vadd.f32 %v608_v8, %v607_v3  ;;  %v616_v16 = vadd.f32 %v615_v9, %v614_v7 }
 0x169   : > { %v599_v48 = vrot.slane %v598_v45, 1  ;;  %v610_v19 = vrot.slane %v609_v13, 1  ;;  %v617_v26 = vrot.slane %v616_v16, 1 }
 0x16b   : > { %v600_v53 = vadd.f32 %v599_v48, %v598_v45  ;;  %v611_v33 = vadd.f32 %v610_v19, %v609_v13  ;;  %v618_v36 = vadd.f32 %v617_v26, %v616_v16 }
 0x16d   : > { %v619_v56 = vmul.f32 %v600_v53, %v590_v50  ;;  %v620_v57 = vmul.f32 %v600_v53, %v591_v51 }
 0x16f   : > { %v621_v59 = vadd.f32 %v619_v56, %v619_v56  ;;  %v622_v60 = vadd.f32 %v620_v57, %v620_v57 }
 0x171   : > { %v623_v63 = vadd.f32 %v621_v59, %v619_v56  ;;  %v624_v2 = vadd.f32 %v622_v60, %v620_v57 }
 0x173   : > { %v625_v4 = vadd.f32 1e-06, %v623_v63  ;;  %v626_v5 = vadd.f32 1e-06, %v624_v2 }
 0x175   : > { %1072 = vrcp.f32 %v625_v4  ;;  %v638_v20 = vand.u32 2147483648, %v625_v4  ;;  %v636_v23 = vand.u32 2147483647, %v625_v4  ;;  %v652_v25 = vand.u32 2147483648, %v626_v5 }
 0x176   : > { %1074 = vrcp.f32 %v626_v5  ;;  %v650_v28 = vand.u32 2147483647, %v626_v5  ;;  %vm632_vm4 = vweird.f32 %v625_v4  ;;  %vm646_vm6 = vweird.f32 %v626_v5 }
 0x177   : > { %v639_v31 = vor.u32 1.1754944e-38, %v638_v20  ;;  %vm637_vm7 = vcmp.eq.f32.partialorder %v636_v23, 8.507059e+37  ;;  %v653_v35 = vor.u32 1.1754944e-38, %v652_v25 }
 0x178   : > { %vm651_vm9 = vcmp.eq.f32.partialorder %v650_v28, 8.507059e+37 }
 0x17b   : > { %v1073_v10 = vpop.eup %1072 }
 0x17c   : > { %v1075_v14 = vpop.eup %1074  ;;  %v628_v15 = vmul.f32 %v1073_v10, %v625_v4  ;;  %vm633_vm2 = vweird.f32 %v1073_v10  ;;  %v192_v4 = vlaneseq }
 0x17d   : > { %v642_v17 = vmul.f32 %v1075_v14, %v626_v5  ;;  %vm647_vm3 = vweird.f32 %v1075_v14  ;;  %vm634_vm5 = vmor %vm632_vm4, %vm633_vm2 }
 0x17e   : > { %v629_v18 = vsub.f32 1.0, %v628_v15  ;;  %vm648_vm8 = vmor %vm646_vm6, %vm647_vm3 }
 0x17f   : > { %v643_v21 = vsub.f32 1.0, %v642_v17  ;;  %v193_v17 = vand.u32 127, %v192_v4 }
 0x180   : > { %v630_v22 = vmul.f32 %v1073_v10, %v629_v18 }
 0x181   : > { %v644_v27 = vmul.f32 %v1075_v14, %v643_v21  ;;  %vm714_vm3 = vcmp.eq.s32.totalorder %v193_v17, 0  ;;  %vm717_vm4 = vcmp.eq.s32.totalorder %v193_v17, 1 }
 0x182   : > { %v631_v30 = vadd.f32 %v1073_v10, %v630_v22 }
 0x183   : > { %v645_v32 = vadd.f32 %v1075_v14, %v644_v27 }
 0x184   : > { %v635_v34 = vsel %vm634_vm5, %v1073_v10, %v631_v30  ;;  %vm720_vm5 = vcmp.eq.s32.totalorder %v193_v17, 2 }
 0x185   : > { %v640_v37 = vsel %vm637_vm7, %v639_v31, %v635_v34  ;;  %v649_v38 = vsel %vm648_vm8, %v1075_v14, %v645_v32 }
 0x186   : > { %v654_v39 = vsel %vm651_vm9, %v653_v35, %v649_v38  ;;  %v655_v40 = vmul.f32 %v640_v37, %v611_v33 }
 0x187   : > { %v656_v41 = vmul.f32 %v654_v39, %v618_v36 }
 0x188   : > { %v1344_v42 = vmul.f32 %v655_v40, %v590_v50 }
 0x189   : > { %v1346_v43 = vmul.f32 %v656_v41, %v591_v51 }
 0x18a   : > { %v664_v44 = vmul.f32 %v1344_v42, %v1312_v62  ;;  %v659_v45 = vmul.f32 %v1344_v42, %v1344_v42  ;;  %v666_v50 = vmul.f32 %v1344_v42, %v1318_v11  ;;  %v191_v11 = vld [vmem:[%s1418_s2] sm:$0xff] }
 0x18b   : > { %v665_v46 = vmul.f32 %v1346_v43, %v1314_v1  ;;  %v660_v47 = vmul.f32 %v1346_v43, %v1346_v43  ;;  %v667_v51 = vmul.f32 %v1346_v43, %v1320_v12  ;;  %v725_v63 = vsel %vm723_vm10, %v191_v11, 0 }
 0x18c   : > { %v1365_v8 = vand.u32 4294901760, %v725_v63 }
 0x18d   : > { %v668_v48 = vadd.f32 %v665_v46, %v664_v44  ;;  %v661_v49 = vadd.f32 %v660_v47, %v659_v45  ;;  %v671_v62 = vadd.f32 %v667_v51, %v666_v50 }
 0x18e   : > { %v746_v20 = vsub.f32 %v725_v63, %v1365_v8 }
 0x18f   : > { %669 = vadd.xlane.f32.xlu2 %v668_v48  ;;  %662 = vadd.xlane.f32.xlu1 %v661_v49 }
 0x190   : > { %v747_v32 = vand.u32 4294901760, %v746_v20 }
 0x192   : > { %v748_v38 = vsub.f32 %v746_v20, %v747_v32 }
 0x194   : > { %v749_v47 = vand.u32 4294901760, %v748_v38 }
 0x197   : > { %672 = vadd.xlane.f32.xlu1 %v671_v62 }
 0x202   : > { %v663_v52 = vpop.xlane.xlu1 %662  ;;  %v670_v23 = vpop.xlane.xlu2 %669 }
 0x203   : > { %v674_v53 = vmul.f32 %v663_v52, %v1328_v24  ;;  %v675_v1 = vmul.f32 %v663_v52, %v1330_v29  ;;  %v1179_v52 = vmov 2  }
 0x204   : > { %1068 = vset.pattern.permute.xlu1 %v1179_v52 }
 0x205   : > { %v676_v54 = vadd.f32 %v674_v53, %v674_v53  ;;  %v677_v55 = vadd.f32 %v675_v1, %v675_v1 }
 0x207   : > { %v678_v56 = vadd.f32 %v676_v54, %v674_v53  ;;  %v679_v57 = vadd.f32 %v677_v55, %v675_v1  ;;  %v1180_v53 = vmov 1   ;;  %v1181_v1 = vmov 0  }
 0x208   : > { %1067 = vset.pattern.permute.xlu0 %v1180_v53  ;;  %1066 = vset.pattern.permute.xlu2 %v1181_v1 }
 0x209   : > { %v680_v58 = vadd.f32 1e-06, %v678_v56  ;;  %v681_v59 = vadd.f32 1e-06, %v679_v57 }
 0x20a   : > { %v673_v30 = vpop.xlane.xlu1 %672 }
 0x20b   : > { %1076 = vrcp.f32 %v680_v58  ;;  %v693_v5 = vand.u32 2147483648, %v680_v58  ;;  %v691_v10 = vand.u32 2147483647, %v680_v58  ;;  %v707_v13 = vand.u32 2147483648, %v681_v59 }
 0x20c   : > { %1078 = vrcp.f32 %v681_v59  ;;  %v705_v15 = vand.u32 2147483647, %v681_v59  ;;  %vm687_vm13 = vweird.f32 %v680_v58  ;;  %vm701_vm15 = vweird.f32 %v681_v59 }
 0x20d   : > { %v694_v18 = vor.u32 1.1754944e-38, %v693_v5  ;;  %vm692_vm0 = vcmp.eq.f32.partialorder %v691_v10, 8.507059e+37  ;;  %v708_v22 = vor.u32 1.1754944e-38, %v707_v13 }
 0x20e   : > { %vm706_vm2 = vcmp.eq.f32.partialorder %v705_v15, 8.507059e+37 }
 0x211   : > { %v1077_v12 = vpop.eup %1076 }
 0x212   : > { %v1079_v60 = vpop.eup %1078  ;;  %v683_v61 = vmul.f32 %v1077_v12, %v680_v58  ;;  %vm688_vm11 = vweird.f32 %v1077_v12 }
 0x213   : > { %v697_v2 = vmul.f32 %v1079_v60, %v681_v59  ;;  %vm702_vm12 = vweird.f32 %v1079_v60  ;;  %vm689_vm14 = vmor %vm687_vm13, %vm688_vm11 }
 0x214   : > { %v684_v3 = vsub.f32 1.0, %v683_v61  ;;  %vm703_vm1 = vmor %vm701_vm15, %vm702_vm12 }
 0x215   : > { %v698_v7 = vsub.f32 1.0, %v697_v2 }
 0x216   : > { %v685_v9 = vmul.f32 %v1077_v12, %v684_v3 }
 0x217   : > { %v699_v14 = vmul.f32 %v1079_v60, %v698_v7 }
 0x218   : > { %v686_v16 = vadd.f32 %v1077_v12, %v685_v9 }
 0x219   : > { %v700_v19 = vadd.f32 %v1079_v60, %v699_v14 }
 0x21a   : > { %v690_v21 = vsel %vm689_vm14, %v1077_v12, %v686_v16 }
 0x21b   : > { %v695_v25 = vsel %vm692_vm0, %v694_v18, %v690_v21  ;;  %v704_v26 = vsel %vm703_vm1, %v1079_v60, %v700_v19 }
 0x21c   : > { %v709_v27 = vsel %vm706_vm2, %v708_v22, %v704_v26  ;;  %v710_v28 = vmul.f32 %v695_v25, %v670_v23 }
 0x21d   : > { %v711_v31 = vmul.f32 %v709_v27, %v673_v30 }
 0x21e   : > { %v712_v33 = vmul.f32 %v710_v28, %v1328_v24 }
 0x21f   : > { %v713_v34 = vmul.f32 %v711_v31, %v1330_v29 }
 0x220   : > { %v715_v35 = vsel %vm714_vm3, %v712_v33, 0.0 }
 0x221   : > { %v716_v36 = vsel %vm714_vm3, %v713_v34, 0.0  ;;  %v718_v37 = vsel %vm717_vm4, %v712_v33, %v715_v35 }
 0x222   : > { %v719_v39 = vsel %vm717_vm4, %v713_v34, %v716_v36  ;;  %v721_v40 = vsel %vm720_vm5, %v712_v33, %v718_v37 }
 0x223   : > { %v722_v41 = vsel %vm720_vm5, %v713_v34, %v719_v39  ;;  %v743_v44 = vand.u32 4294901760, %v721_v40 }
 0x224   : > { %v741_v45 = vand.u32 4294901760, %v722_v41 }
 0x225   : > { %v775_v46 = vsub.f32 %v721_v40, %v743_v44 }
 0x226   : > { %742 = vmatpush.msrb.mxu0 %v741_v45  ;;  %826 = vmatpush.msrb.mxu3 %v741_v45  ;;  %v769_v48 = vsub.f32 %v722_v41, %v741_v45 }
 0x227   : > { %v776_v49 = vand.u32 4294901760, %v775_v46 }
 0x228   : > { %744 = vmatpush.msrb.mxu0 %v743_v44  ;;  %801 = vmatpush.msrb.mxu2 %v769_v48  ;;  %v770_v24 = vand.u32 4294901760, %v769_v48 }
 0x229   : > { %828 = vmatpush.msrb.mxu3 %v743_v44  ;;  %750 = vmatmul.f32.vlgmr.msrb.gmra.mxu0 %v749_v47  ;;  %v777_v50 = vsub.f32 %v775_v46, %v776_v49 }
 0x22a   : > { %804 = vmatpush.msrb.mxu2 %v775_v46  ;;  %853 = vmatpush.msra.mxu0 %v770_v24  ;;  %v771_v29 = vsub.f32 %v769_v48, %v770_v24 }
 0x22b   : > { %807 = vmatmul.f32.vlgmr.msrb.gmra.mxu2 %v746_v20  ;;  %832 = vmatmul.f32.vlgmr.msrb.gmra.mxu3 %v747_v32  ;;  %v778_v62 = vand.u32 4294901760, %v777_v50 }
 0x22c   : > { %857 = vmatpush.msra.mxu0 %v776_v49  ;;  %v772_v51 = vand.u32 4294901760, %v771_v29 }
 0x22e   : > { %773 = vmatpush.msrb.mxu1 %v772_v51 }
 0x230   : > { %779 = vmatpush.msrb.mxu1 %v778_v62 }
 0x231   : > { %781 = vmatmul.f32.vlgmr.msrb.gmra.mxu1 %v1365_v8  ;;  %859 = vmatmul.f32.vlgmr.msra.gmra.mxu0 %v1365_v8 }
 0x232   : > { %878 = vmatpush.msra.mxu1 %v741_v45 }
 0x234   : > { %880 = vmatpush.msra.mxu1 %v743_v44 }
 0x239   : > { %882 = vmatmul.f32.vlgmr.msra.gmra.mxu1 %v1365_v8 }
 0x2a6   : > { %v751_v54 = vpop.f32.mrf.mxu0 }
 0x2ae   : > { %v782_v55 = vpop.f32.mrf.mxu1  ;;  %v808_v56 = vpop.f32.mrf.mxu2 }
 0x2af   : > { %v783_v57 = vadd.f32 %v782_v55, %v751_v54  ;;  %v833_v58 = vpop.f32.mrf.mxu3  ;;  %v860_v11 = vpop.f32.mrf.mxu0 }
 0x2b1   : > { %v809_v59 = vadd.f32 %v808_v56, %v783_v57 }
 0x2b3   : > { %v834_v12 = vadd.f32 %v833_v58, %v809_v59 }
 0x2b5   : > { %v861_v60 = vadd.f32 %v860_v11, %v834_v12 }
 0x2b6   : > { %v883_v61 = vpop.f32.mrf.mxu1 }
 0x2b7   : > { %v884_v63 = vadd.f32 %v883_v61, %v861_v60 }
 0x2b9   : > { %902 = vperm.xlu1 %1068, %v884_v63   ;;  %894 = vperm.xlu0 %1067, %v884_v63  }
 0x2ba   : > { %888 = vperm.xlu2 %1066, %v884_v63  }
 0x2c1   : > { %1069 = vset.pattern.permute.xlu0 %v1179_v52 }
 0x314   : > { %v889_v2 = vpop.permute.xlu2 %888 }
 0x315   : > { %v891_v5 = vmul.f32 %v889_v2, %v1344_v42  ;;  %v892_v7 = vmul.f32 %v889_v2, %v1346_v43 }
 0x32b   : > { %v903_v3 = vpop.permute.xlu1 %902  ;;  %v895_v4 = vpop.permute.xlu0 %894 }
 0x32c   : > { %v897_v8 = vmul.f32 %v895_v4, %v1344_v42  ;;  %v898_v9 = vmul.f32 %v895_v4, %v1346_v43  ;;  %v905_v10 = vmul.f32 %v903_v3, %v1344_v42  ;;  %v906_v13 = vmul.f32 %v903_v3, %v1346_v43 }
 0x32e   : > { %v899_v14 = vadd.f32 %v897_v8, %v891_v5  ;;  %v900_v15 = vadd.f32 %v898_v9, %v892_v7 }
 0x330   : > { %v907_v16 = vadd.f32 %v905_v10, %v899_v14  ;;  %v908_v17 = vadd.f32 %v906_v13, %v900_v15 }
 0x332   : > { %v909_v18 = vadd.f32 %v907_v16, %v1298_v0  ;;  %v910_v19 = vadd.f32 %v908_v17, %v1307_v6 }
 0x334   : > { %911 = vst [vmem:[%s188_s16] sm:$0xff] %v909_v18 }
 0x335   : > { %912 = vst [vmem:[%s188_s16 + $0x8] sm:$0xff] %v910_v19 }
 0x336   : > { %1137 = shalt.err (!%p1134_p4)
}
 0x337   : > { %1018 = dma.vmem_to_hbm [thread:$0]  (%p1252_p11), %s928_s19, 256, %s930_s20, %s914_s22  }
 0x338 PF: > { %s941_s26 = sand.u32 1, %s1164_s12   ;;  %p1425_p7 = scmp.ge.s32.totalorder %s1176_s15, 2 }
 0x339   : > { %s942_s7 = scalar_lea.sflag [#allocation4], %s941_s26 }
 0x33a   : > { %p1025_p5 = pnand %p1425_p7, %p1256_p12 }
 0x33c   : > { %p1026_p8 = pneg %p1025_p5 }
 0x33e   : > { %1159 = dma.done.wait (%p1026_p8), %s942_s7, 256  }
 0x33f   : > { %1161 = vsyncadd (%p1026_p8), %s942_s7, 4294967040  ;;  %p16_p10 = scmp.ge.s32.totalorder %s1227_s18, 4   ;;  %s1426_s12 = smov %s1168_s13 }
 0x340   : > { %s1427_s13 = smov %s1172_s14  ;;  %s1428_s14 = smov %s1239_s21 }
 0x341   : > { %s1429_s15 = smov %s1227_s18  ;;  %18 = sbr.rel (!%p16_p10) target bundleno = 5 (0x5), region = 77 }
 0x346   :  { %948 = vsyncpa [#allocation3], 1 }
 0x347   :  { %950 = vsyncpa [#allocation3 + $0x1], 1 }
 0x348   :  { %951 = vsyncpa [#allocation4], 1 }
 0x349   :  { %953 = vsyncpa [#allocation4 + $0x1], 1 }

</bundles_post_ra>
